<compile_context>
chip_gen: v7x
topology: tpu7x:2x2x1
jax: 0.10.0
libtpu: 0.0.40
codegen_flags: <defaults>
</compile_context>

<pallas_src>
import jax
import jax.numpy as jnp
from jax.experimental import pallas as pl
from jax.experimental.pallas import tpu as pltpu


# Lane widths to try for the free row-major reshape (widest first: bigger DMAs,
# fully dense unmasked stores, fewer grid steps).  All are multiples of 128.
_LANE_CANDIDATES = (2048, 1024, 512, 256, 128)

# ~2 MiB tiles: input + output are double-buffered separately, so the per-step
# VMEM footprint is ~8 MiB.  That fits the scoped-VMEM default on every
# generation (16 MiB v5e, 32 MiB v6e/v7x) while reaching ~85% of the HBM
# roofline for a memory-bound elementwise op.
_TARGET_BLOCK_BYTES = 2 * 1024 * 1024


def _sublane_multiple(dtype) -> int:
    """Dtype-native sublane packing: 8 for f32, 16 for bf16/f16, 32 for int8/fp8."""
    return max(8, 32 // jnp.dtype(dtype).itemsize)


def _neg_scale_kernel(neg_lam_ref, g_ref, o_ref):
    # neg_lam lives in SMEM: one scalar-slot read per tile, nowhere near the
    # DMA bottleneck.  Body is one load, one VPU multiply, one store per vreg.
    o_ref[...] = (g_ref[...] * neg_lam_ref[0]).astype(o_ref.dtype)


def _run_neg_scale(g, lam):
    """dx = -lam * g with a tiled Pallas kernel (memory-bound, HBM roofline)."""
    neg_lam = (-jnp.asarray(lam, jnp.float32)).reshape(1)

    if g.ndim == 0 or g.size == 0:
        # Degenerate shapes: not worth a kernel launch.
        return (g * neg_lam[0]).astype(g.dtype)

    n = g.size
    itemsize = jnp.dtype(g.dtype).itemsize

    # ---- lane width: ALWAYS a multiple of 128 (lane-dense, unmasked stores) --
    lane = None
    for cand in _LANE_CANDIDATES:
        if n % cand == 0:
            lane = cand
            break

    padded = False
    if lane is None:
        # Ragged total size: pad the flattened gradient up to a 128-multiple
        # instead of using a sub-128 lane (masked vst.msk partial stores are
        # the single biggest measured penalty for mem-bound kernels; padding
        # at most lane-1 elements is noise by comparison).
        padded = True
        lane = 128
        for cand in _LANE_CANDIDATES:
            if n >= 8 * cand:          # keep at least ~8 rows when possible
                lane = cand
                break

    rows = pl.cdiv(n, lane)
    if padded:
        pad = rows * lane - n
        slab = jnp.pad(g.reshape(-1), (0, pad)).reshape(rows, lane)
    else:
        slab = g.reshape(rows, lane)   # free row-major reshape, no copies

    # ---- row block: multiple of the dtype-native sublane count --------------
    sub = _sublane_multiple(slab.dtype)
    bytes_per_row = lane * itemsize
    block_rows = max(1, _TARGET_BLOCK_BYTES // bytes_per_row)

    if rows <= sub:
        block_rows = rows                           # full dim -> always legal
    else:
        block_rows = max(sub, (block_rows // sub) * sub)
        block_rows = min(block_rows, rows)
        # v7x has two TensorCores per chip; only a parallel grid axis with
        # >= 2 steps gets sharded across both, so never collapse a mid-sized
        # gradient into a single-step grid.
        if block_rows >= rows and rows >= 2 * sub:
            block_rows = max(sub, ((rows // 2) // sub) * sub)

    grid = (pl.cdiv(rows, block_rows),)

    out = pl.pallas_call(
        _neg_scale_kernel,
        out_shape=jax.ShapeDtypeStruct(slab.shape, slab.dtype),
        grid=grid,
        in_specs=[
            pl.BlockSpec(memory_space=pltpu.MemorySpace.SMEM),       # -lambda
            pl.BlockSpec((block_rows, lane), lambda i: (i, 0)),      # grads
        ],
        out_specs=pl.BlockSpec((block_rows, lane), lambda i: (i, 0)),
        # Write dx in place of the (dead) upstream-gradient buffer.  If XLA
        # cannot prove the buffer dead it inserts a copy (perf hazard only,
        # never a correctness issue).
        input_output_aliases={1: 0},
        compiler_params=pltpu.CompilerParams(
            dimension_semantics=("parallel",)),
        cost_estimate=pl.CostEstimate(
            flops=n, transcendentals=0,
            bytes_accessed=2 * n * itemsize),
    )(neg_lam, slab)

    if padded:
        return out.reshape(-1)[:n].reshape(g.shape)
    return out.reshape(g.shape)


# -----------------------------------------------------------------------------
# GradientReversal: forward identity, backward -lambda * grads.
# lambda_ is a runtime f32 scalar operand (not baked into the kernel), matching
# the PyTorch module where it is a plain attribute, and avoiding a recompile
# every time lambda is annealed during training.
# -----------------------------------------------------------------------------
@jax.custom_vjp
def gradient_reversal(x, lambda_=1.0):
    # Forward is the identity; no kernel, no extra HBM traffic.
    return x


def _grl_fwd(x, lambda_):
    return x, jnp.asarray(lambda_, jnp.float32)


def _grl_bwd(lam, g):
    # TODO(synk): inside a larger backward graph, a plain `(-lam) * g` lets XLA
    # fuse the scale into adjacent ops and skip this HBM round trip entirely;
    # the standalone Pallas kernel is used here per the kernel-port spec.
    return _run_neg_scale(g, lam), jnp.zeros_like(lam)


gradient_reversal.defvjp(_grl_fwd, _grl_bwd)


class GradientReversal:
    """JAX/Pallas equivalent of the PyTorch GradientReversal module."""

    def __init__(self, lambda_=1.0):
        # Concrete (non-weak) f32 scalar -> runtime operand of the backward
        # kernel; changing its value never triggers recompilation.
        self.lambda_ = jnp.float32(lambda_)

    def __call__(self, x):
        return gradient_reversal(x, self.lambda_)


# -----------------------------------------------------------------------------
# Main
# -----------------------------------------------------------------------------
if __name__ == "__main__":
    key = jax.random.PRNGKey(0)

    # Small NCHW input, same convention as the PyTorch module.
    x = jax.random.normal(key, (2, 4, 16, 16), dtype=jnp.float32)

    grl = GradientReversal(lambda_=1.0)

    # Forward: identity.
    y = jax.block_until_ready(grl(x))
    assert y.shape == x.shape and y.dtype == x.dtype
    assert jnp.array_equal(y, x), "forward must be identity"

    # Backward: d/dx sum(grl(x)) == -lambda everywhere.
    g = jax.block_until_ready(jax.grad(lambda xx: jnp.sum(grl(xx)))(x))
    assert jnp.allclose(g, -1.0), "backward must be -lambda * grads"

    # Non-unit lambda.
    grl_half = GradientReversal(lambda_=0.5)
    g_half = jax.block_until_ready(
        jax.grad(lambda xx: jnp.sum(grl_half(xx)))(x))
    assert jnp.allclose(g_half, -0.5), "backward must scale by -lambda"

    # Multi-block parallel grid + partial last block (lane-dense, no padding).
    big = jax.random.normal(jax.random.PRNGKey(1), (8, 16, 96, 96),
                            dtype=jnp.float32)
    dx = jax.block_until_ready(_run_neg_scale(big, jnp.float32(2.0)))
    assert jnp.allclose(dx, -2.0 * big), "kernel must compute -lambda * g"

    # Ragged total size (not a multiple of 128) -> pad-and-slice path.
    ragged = jax.random.normal(jax.random.PRNGKey(2), (3, 5, 7),
                               dtype=jnp.float32)
    dxr = jax.block_until_ready(_run_neg_scale(ragged, jnp.float32(1.0)))
    assert jnp.allclose(dxr, -ragged), "ragged path must be exact"

    # bf16 gradients (dtype-native 16-row sublane packing).
    bf = jax.random.normal(jax.random.PRNGKey(3), (2, 384)).astype(jnp.bfloat16)
    dxb = jax.block_until_ready(_run_neg_scale(bf, jnp.float32(1.5)))
    assert jnp.allclose(dxb.astype(jnp.float32),
                        -1.5 * bf.astype(jnp.float32),
                        atol=1e-2, rtol=1e-2), "bf16 path must be -lambda * g"

    print("KERNEL_OK")
</pallas_src>

<mosaic_0001>
module attributes {stable_mosaic.version = 11 : i64} {
  func.func @_neg_scale_kernel(%arg0: i32, %arg1: memref<1xf32, #tpu.memory_space<smem>>, %arg2: memref<1x2048xf32, #tpu.memory_space<vmem>>, %arg3: memref<1x2048xf32, #tpu.memory_space<vmem>>) attributes {dimension_semantics = [#tpu.dimension_semantics<parallel>], iteration_bounds = array<i64: 1>, scalar_prefetch = 0 : i64, scratch_operands = 0 : i64, tpu.core_type = #tpu.core_type<tc>, window_params = [{transform_indices = @transform_0, window_bounds = array<i64: 1>}, {transform_indices = @transform_1, window_bounds = array<i64: 1, 2048>}, {transform_indices = @transform_2, window_bounds = array<i64: 1, 2048>}]} {
    %c0 = arith.constant 0 : index
    %c0_0 = arith.constant 0 : index
    %0 = vector.load %arg2[%c0, %c0_0] : memref<1x2048xf32, #tpu.memory_space<vmem>>, vector<1x2048xf32>
    %c0_1 = arith.constant 0 : index
    %1 = memref.load %arg1[%c0_1] : memref<1xf32, #tpu.memory_space<smem>>
    %2 = vector.broadcast %1 : f32 to vector<1x2048xf32>
    %3 = arith.mulf %0, %2 : vector<1x2048xf32>
    %c0_2 = arith.constant 0 : index
    %c0_3 = arith.constant 0 : index
    %4 = vector.load %arg3[%c0_2, %c0_3] : memref<1x2048xf32, #tpu.memory_space<vmem>>, vector<1x2048xf32>
    tpu.vector_store %arg3[%c0_2, %c0_3], %3 {strides = array<i32>} : memref<1x2048xf32, #tpu.memory_space<vmem>>, vector<1x2048xf32>,
    return
  }
  func.func @transform_0(%arg0: i32) -> i32 {
    %c0_i32 = arith.constant 0 : i32
    %c0_i32_0 = arith.constant 0 : i32
    return %c0_i32 : i32
  }
  func.func @transform_1(%arg0: i32) -> (i32, i32) {
    %c0_i32 = arith.constant 0 : i32
    %c0_i32_0 = arith.constant 0 : i32
    return %arg0, %c0_i32 : i32, i32
  }
  func.func @transform_2(%arg0: i32) -> (i32, i32) {
    %c0_i32 = arith.constant 0 : i32
    %c0_i32_0 = arith.constant 0 : i32
    return %arg0, %c0_i32 : i32, i32
  }
}

</mosaic_0001>

<bundles_post_ra>
// kernel: tpu_custom_call.1
= control target key start
LH: loop header
LB: loop body
LE: loop exit
PB: predicated region body
PF: predicated region fallthrough
CT: control target
= control target key end

     0   :  { %8 = vsyncpa [#allocation4], 0  ;;  %s142_s0 = inlined_call_operand.<no memory space> [shape: f32[1], index: 0, kind: input, shape index: {}]   ;;  %s143_s1 = inlined_call_operand.hbm [shape: f32[1,2048], index: 1, kind: input, shape index: {}, may-alias: {1,2}]   ;;  %s144_s2 = inlined_call_operand.hbm [shape: f32[1,2048], index: 2, kind: output, shape index: {}, may-alias: {1,2}]  }
   0x1   :  { %9 = vsyncpa [#allocation5], 0  ;;  %s98_s9 = smov [#allocation3]   ;;  %s50_s13 = scalar_lea.hbm %s143_s1, 256 }
   0x2   :  { %s18_s10 = sshll.u32 %s98_s9, 4  ;;  %p51_p0 = scmp.ne.s32.totalorder %s143_s1, %s50_s13  ;;  %s19_s10 = int_to_ptr.vmem [resolvable:$true] %s18_s10 }
   0x3   :  { %p54_p1 = scmp.lt.u32.totalorder %s50_s13, %s143_s1 }
   0x5   :  { %p56_p2 = pnand %p54_p1, %p51_p0 }
   0x7   :  { %59 = shalt.err (!%p56_p2)
}
   0x8   :  { %s60_s18 = scalar_lea.vmem %s19_s10, 256  ;;  %p65_p4 = scmp.lt.s32.totalorder %s19_s10, %s19_s10 }
   0x9   :  { %p61_p3 = scmp.ne.s32.totalorder %s19_s10, %s60_s18  ;;  %p66_p5 = scmp.lt.s32.totalorder %s60_s18, %s60_s18 }
   0xb   :  { %p67_p6 = por %p66_p5, %p65_p4 }
   0xd   :  { %p68_p7 = pnand %p67_p6, %p61_p3 }
   0xf   :  { %71 = shalt.err (!%p68_p7)
}
  0x10   :  { %21 = dma.hbm_to_vmem [thread:$0]  %s143_s1, 256, %s19_s10, [#allocation4]  }
  0x11   :  { %94 = dma.done.wait [#allocation4], 256  }
  0x12   :  { %95 = vsyncadd [#allocation4], 4294967040  ;;  %v28_v0 = vstv %s142_s0  ;;  %s99_s23 = smov [#allocation6]   ;;  %v25_v1 = vld [vmem:[#allocation3] sm:$0xff]  ;;  %v26_v2 = vld [vmem:[#allocation3 + $0x8] sm:$0xff] }
  0x13   :  { %s39_s24 = sshll.u32 %s99_s23, 4  ;;  %v29_v3 = vmul.f32 %v28_v0, %v25_v1  ;;  %v30_v4 = vmul.f32 %v28_v0, %v26_v2  ;;  %s40_s24 = int_to_ptr.vmem [resolvable:$true] %s39_s24 }
  0x14   :  { %s72_s25 = scalar_lea.vmem %s40_s24, 256  ;;  %p77_p9 = scmp.lt.s32.totalorder %s40_s24, %s40_s24 }
  0x15   :  { %31 = vst [vmem:[#allocation6] sm:$0xff] %v29_v3  ;;  %32 = vst [vmem:[#allocation6 + $0x8] sm:$0xff] %v30_v4  ;;  %p73_p8 = scmp.ne.s32.totalorder %s40_s24, %s72_s25  ;;  %p78_p10 = scmp.lt.s32.totalorder %s72_s25, %s72_s25 }
  0x17   :  { %p79_p11 = por %p78_p10, %p77_p9 }
  0x19   :  { %p80_p12 = pnand %p79_p11, %p73_p8 }
  0x1b   :  { %83 = shalt.err (!%p80_p12)
}
  0x1c   :  { %s84_s0 = scalar_lea.hbm %s144_s2, 256 }
  0x1d   :  { %p85_p13 = scmp.ne.s32.totalorder %s144_s2, %s84_s0  ;;  %p88_p0 = scmp.lt.u32.totalorder %s84_s0, %s144_s2 }
  0x1f   :  { %p90_p1 = pnand %p88_p0, %p85_p13 }
  0x21   :  { %93 = shalt.err (!%p90_p1)
}
  0x22   :  { %42 = dma.vmem_to_hbm [thread:$0]  %s40_s24, 256, %s144_s2, [#allocation5]  }
  0x23   :  { %96 = dma.done.wait [#allocation5], 256  }
  0x24   :  { %97 = vsyncadd [#allocation5], 4294967040 }
  0x25   :  { %46 = vsyncpa [#allocation4], 1 }
  0x26   :  { %47 = vsyncpa [#allocation5], 1 }

</bundles_post_ra>
